<compile_context>
chip_gen: v7x
topology: tpu7x:2x2x1
jax: 0.10.0
libtpu: 0.0.40
codegen_flags: <defaults>
</compile_context>

<pallas_src>
import functools
import math

import jax
import jax.numpy as jnp
from jax import lax
from jax.experimental import pallas as pl
from jax.experimental.pallas import tpu as pltpu


# ---------------------------------------------------------------------------
# Generation-aware hardware caps
# ---------------------------------------------------------------------------
@functools.lru_cache(maxsize=None)
def _chip_caps():
    """(physical VMEM bytes per TensorCore, #TensorCores per chip heuristic)."""
    vmem = 128 << 20
    try:
        info = pltpu.get_tpu_info()
        v = getattr(info, "vmem_capacity_bytes", None)
        if v:
            vmem = int(v)
    except Exception:
        pass
    # v7x exposes 64 MiB VMEM per TensorCore and has 2 TCs/chip; v5e/v6e have 128 MiB, 1 TC.
    num_tc = 2 if vmem <= (96 << 20) else 1
    return vmem, num_tc


def _vmem_budget(nbytes):
    """Explicit scoped-VMEM budget (defaults are only 16/32 MiB); leave 8 MiB headroom."""
    vmem_cap, _ = _chip_caps()
    cap = vmem_cap - (8 << 20)
    return int(min(max(nbytes + (4 << 20), 8 << 20), cap))


_TARGET_BLOCK_BYTES = 4 << 20   # ~4 MiB lane-dense tiles (measured roofline sweet spot)


def _pick_tile_s(s, c, itemsize, target_block_bytes):
    """Lane-dense spatial tile: a multiple of 128 (or the full extent when small)."""
    max_lanes = max(128, target_block_bytes // max(1, c * itemsize))
    max_lanes = (max_lanes // 128) * 128
    return s if s <= max_lanes else max_lanes


def _fold_factor(c, s, itemsize):
    """Lane-density fold for small spatial extents: view (N, C, S) as (N, C//k, k*S) so
    the excite output tile is (nearly) lane-dense instead of S/128 masked stores."""
    if s % 128 == 0 or s >= 512:
        return 1
    if c * s * itemsize > (8 << 20):       # folded path keeps a whole channel slab per block
        return 1
    k = 1
    while (c % (2 * k) == 0) and (k * s < 512) and (c // (2 * k) >= 8):
        k *= 2
    return k


# ---------------------------------------------------------------------------
# Fused single-block path (small activations: everything resident in VMEM)
# ---------------------------------------------------------------------------
def _flusion_fused_kernel(a_ref, b_ref, w1a_ref, w1b_ref, b1_ref,
                          wa_ref, ba_ref, wb_ref, bb_ref,
                          a_out_ref, b_out_ref, *, n_a, n_b, inv_s_a, inv_s_b):
    # ---- Squeeze: global average pool (f32 accumulation, 1/S folded as a scalar) ----
    sa = jnp.sum(a_ref[...].astype(jnp.float32), axis=-1) * inv_s_a   # (N_A, C_A)
    sb = jnp.sum(b_ref[...].astype(jnp.float32), axis=-1) * inv_s_b   # (N_B, C_B)

    # ---- Tiny MLP: W1 is pre-split on the host, so no lane-axis concat in-kernel ----
    za = jnp.dot(sa, w1a_ref[...], preferred_element_type=jnp.float32)  # (N_A, H)
    if n_a * 2 == n_b:                       # SA.repeat(2, 1): cheap sublane replicate
        za = jnp.concatenate([za, za], axis=0)
    z = za + jnp.dot(sb, w1b_ref[...], preferred_element_type=jnp.float32) + b1_ref[...]

    ea = jnp.dot(z, wa_ref[...], preferred_element_type=jnp.float32) + ba_ref[...]
    eb = jnp.dot(z, wb_ref[...], preferred_element_type=jnp.float32) + bb_ref[...]
    ea = ea[:n_a]                            # EA = EA[0:N_A] (no-op slice when N_A == N_B)

    # ---- 2 * softmax over channels: exact f32 ((N, C)-sized compute, negligible) ----
    pa = jnp.exp(ea - jnp.max(ea, axis=1, keepdims=True))
    scale_a = (2.0 * pa) / jnp.sum(pa, axis=1, keepdims=True)
    pb = jnp.exp(eb - jnp.max(eb, axis=1, keepdims=True))
    scale_b = (2.0 * pb) / jnp.sum(pb, axis=1, keepdims=True)

    # ---- Excite: multiply in the activation dtype (bf16-native VPU on v6e/v7x) ----
    a_out_ref[...] = (a_ref[...] * scale_a.astype(a_ref.dtype)[:, :, None]
                      ).astype(a_out_ref.dtype)
    b_out_ref[...] = (b_ref[...] * scale_b.astype(b_ref.dtype)[:, :, None]
                      ).astype(b_out_ref.dtype)
    # TODO(synk): for working sets near the fused gate, split the excite over a short
    # spatial grid so the output writeback DMA overlaps the multiply.


def _flusion_fused(A, B, params, vmem_need):
    n_a, c_a = A.shape[0], A.shape[1]
    n_b, c_b = B.shape[0], B.shape[1]
    s_a = math.prod(A.shape[2:])
    s_b = math.prod(B.shape[2:])
    a2 = A.reshape(n_a, c_a, s_a)
    b2 = B.reshape(n_b, c_b, s_b)

    w1, b1, wa, ba, wb, bb = params
    w1a, w1b = w1[:c_a], w1[c_a:]                 # split W1: avoids in-kernel concat
    b1r, bar, bbr = b1.reshape(1, -1), ba.reshape(1, -1), bb.reshape(1, -1)

    kernel = functools.partial(_flusion_fused_kernel, n_a=n_a, n_b=n_b,
                               inv_s_a=1.0 / s_a, inv_s_b=1.0 / s_b)
    vmem = pl.BlockSpec(memory_space=pltpu.MemorySpace.VMEM)

    a_out, b_out = pl.pallas_call(
        kernel,
        out_shape=(jax.ShapeDtypeStruct(a2.shape, A.dtype),
                   jax.ShapeDtypeStruct(b2.shape, B.dtype)),
        in_specs=[vmem] * 9,
        out_specs=(vmem, vmem),
        input_output_aliases={0: 0, 1: 1},        # in-place channel scaling in HBM
        compiler_params=pltpu.CompilerParams(
            vmem_limit_bytes=_vmem_budget(vmem_need)),
    )(a2, b2, w1a, w1b, b1r, wa, bar, wb, bbr)

    return a_out.reshape(A.shape), b_out.reshape(B.shape)


# ---------------------------------------------------------------------------
# Tiled path pass 1: pooled sums
# ---------------------------------------------------------------------------
def _squeeze_kernel(x_ref, sum_ref, *, s_total, tile_s):
    k = pl.program_id(2)

    @pl.when(k == 0)
    def _():
        sum_ref[...] = jnp.zeros_like(sum_ref)

    if s_total % tile_s != 0:
        # Ragged spatial tail: only the last tile pays for the iota/compare/where mask.
        @pl.when(k < pl.num_programs(2) - 1)
        def _():
            sum_ref[...] += jnp.sum(x_ref[...].astype(jnp.float32), axis=-1, keepdims=True)

        @pl.when(k == pl.num_programs(2) - 1)
        def _():
            x = x_ref[...].astype(jnp.float32)
            idx = lax.broadcasted_iota(jnp.int32, x.shape, 2)
            x = jnp.where(idx + k * tile_s < s_total, x, 0.0)
            sum_ref[...] += jnp.sum(x, axis=-1, keepdims=True)
    else:
        sum_ref[...] += jnp.sum(x_ref[...].astype(jnp.float32), axis=-1, keepdims=True)


def _pooled_sum(x2, target_block_bytes):
    """x2: (N, C, S) -> f32 pooled sums of shape (N, C, 1)."""
    n, c, s = x2.shape
    tile_s = _pick_tile_s(s, c, x2.dtype.itemsize, target_block_bytes)
    tile_c = c
    if n < 2 and c % 16 == 0:
        tile_c = c // 2            # second "parallel" axis so megacore (v7x) isn't idle at N=1
    blk_bytes = tile_c * tile_s * x2.dtype.itemsize
    kernel = functools.partial(_squeeze_kernel, s_total=s, tile_s=tile_s)
    return pl.pallas_call(
        kernel,
        out_shape=jax.ShapeDtypeStruct((n, c, 1), jnp.float32),
        grid=(n, c // tile_c, pl.cdiv(s, tile_s)),
        in_specs=[pl.BlockSpec((1, tile_c, tile_s), lambda i, j, k: (i, j, k))],
        out_specs=pl.BlockSpec((1, tile_c, 1), lambda i, j, k: (i, j, 0)),
        cost_estimate=pl.CostEstimate(
            flops=int(x2.size), transcendentals=0,
            bytes_accessed=int(x2.size) * x2.dtype.itemsize + n * c * 4),
        compiler_params=pltpu.CompilerParams(
            dimension_semantics=("parallel", "parallel", "arbitrary"),
            vmem_limit_bytes=_vmem_budget(3 * blk_bytes + 16 * c * 4)),
    )(x2)
    # TODO(synk): lane-dense channel fold (as in the excite kernel) for very small S.


# ---------------------------------------------------------------------------
# Tiled path pass 3: excite (channel-wise scaling)
# ---------------------------------------------------------------------------
def _excite_kernel(x_ref, scale_ref, o_ref):
    # (1, C, tile_s) * (1, C, 1): per-channel scale broadcast along the lane axis.
    o_ref[...] = (x_ref[...] * scale_ref[...]).astype(o_ref.dtype)


def _excite_tiled(x2, scale2d, target_block_bytes):
    n, c, s = x2.shape
    tile_s = _pick_tile_s(s, c, x2.dtype.itemsize, target_block_bytes)
    blk_bytes = c * tile_s * x2.dtype.itemsize
    scale3 = scale2d.astype(x2.dtype)[:, :, None]     # native-dtype multiply (bf16 on v6e/v7x)
    return pl.pallas_call(
        _excite_kernel,
        out_shape=jax.ShapeDtypeStruct(x2.shape, x2.dtype),
        grid=(n, pl.cdiv(s, tile_s)),
        in_specs=[pl.BlockSpec((1, c, tile_s), lambda i, k: (i, 0, k)),
                  pl.BlockSpec((1, c, 1), lambda i, k: (i, 0, 0))],
        out_specs=pl.BlockSpec((1, c, tile_s), lambda i, k: (i, 0, k)),
        input_output_aliases={0: 0},              # in-place scaling in HBM
        cost_estimate=pl.CostEstimate(
            flops=int(x2.size), transcendentals=0,
            bytes_accessed=2 * int(x2.size) * x2.dtype.itemsize
            + int(scale3.size) * scale3.dtype.itemsize),
        compiler_params=pltpu.CompilerParams(
            dimension_semantics=("parallel", "parallel"),
            vmem_limit_bytes=_vmem_budget(5 * blk_bytes + 16 * c * 4)),
    )(x2, scale3)


def _excite_fold_kernel(x_ref, scale_ref, o_ref, *, k, s):
    # x_ref: (1, Cg, k*s) activation in the folded (channel-group, lane) view.
    # scale_ref: (1, Cg, k) f32 per-channel scales.  Expand the scale to the folded lane
    # layout with a tiny {0,1} repeat matrix on the otherwise-idle MXU (robust, avoids an
    # in-kernel minor-dim reshape / jnp.repeat relayout).
    lanes = k * s
    row = lax.broadcasted_iota(jnp.int32, (k, lanes), 0)
    col = lax.broadcasted_iota(jnp.int32, (k, lanes), 1)
    rep = (col // s == row).astype(jnp.float32)
    folded = jnp.dot(scale_ref[0], rep, preferred_element_type=jnp.float32)  # (Cg, k*s)
    o_ref[...] = (x_ref[...] * folded[None].astype(x_ref.dtype)).astype(o_ref.dtype)


def _excite_folded(x2, scale2d, k):
    n, c, s = x2.shape
    cg, lanes = c // k, k * s
    xf = x2.reshape(n, cg, lanes)                    # free row-major reshape in HBM
    scale_f = scale2d.astype(jnp.float32).reshape(n, cg, k)
    tile_cg = cg // 2 if (n < 2 and cg % 16 == 0) else cg   # megacore axis when batch==1
    kern = functools.partial(_excite_fold_kernel, k=k, s=s)
    blk_bytes = tile_cg * lanes * xf.dtype.itemsize
    out = pl.pallas_call(
        kern,
        out_shape=jax.ShapeDtypeStruct(xf.shape, xf.dtype),
        grid=(n, cg // tile_cg),
        in_specs=[pl.BlockSpec((1, tile_cg, lanes), lambda i, g: (i, g, 0)),
                  pl.BlockSpec((1, tile_cg, k), lambda i, g: (i, g, 0))],
        out_specs=pl.BlockSpec((1, tile_cg, lanes), lambda i, g: (i, g, 0)),
        input_output_aliases={0: 0},              # in-place scaling in HBM
        cost_estimate=pl.CostEstimate(
            flops=int(xf.size) + n * cg * k * lanes, transcendentals=0,
            bytes_accessed=2 * int(xf.size) * xf.dtype.itemsize + int(scale_f.size) * 4),
        compiler_params=pltpu.CompilerParams(
            dimension_semantics=("parallel", "parallel"),
            vmem_limit_bytes=_vmem_budget(5 * blk_bytes + (k * lanes + cg * k) * 4)),
    )(xf, scale_f)
    return out.reshape(x2.shape)


def _excite(x2, scale2d, target_block_bytes):
    """x2: (N, C, S); scale2d: (N, C) f32.  Returns x2 * scale (same dtype as x2)."""
    n, c, s = x2.shape
    k = _fold_factor(c, s, x2.dtype.itemsize)
    if k > 1:
        return _excite_folded(x2, scale2d, k)
    return _excite_tiled(x2, scale2d, target_block_bytes)


# ---------------------------------------------------------------------------
# Tiled multi-pass path
# ---------------------------------------------------------------------------
def _flusion_tiled(A, B, params, target_block_bytes):
    n_a, c_a = A.shape[0], A.shape[1]
    n_b, c_b = B.shape[0], B.shape[1]
    s_a = math.prod(A.shape[2:])
    s_b = math.prod(B.shape[2:])
    a2 = A.reshape(n_a, c_a, s_a)
    b2 = B.reshape(n_b, c_b, s_b)

    # Pass 1: tiled pooled sums (Pallas, batch/channel parallel, spatial reduction).
    sa = _pooled_sum(a2, target_block_bytes)[:, :, 0] * (1.0 / s_a)   # (N_A, C_A) f32
    sb = _pooled_sum(b2, target_block_bytes)[:, :, 0] * (1.0 / s_b)   # (N_B, C_B) f32

    # Pass 2: the tiny MLP + softmax in plain JAX ((N, C)-sized compute, negligible).
    w1, b1, wa, ba, wb, bb = params
    sa_rep = jnp.concatenate([sa, sa], axis=0) if n_a * 2 == n_b else sa
    z = sa_rep @ w1[:c_a] + sb @ w1[c_a:] + b1               # == cat(SA, SB) @ W1 + b1
    ea = (z @ wa + ba)[:n_a]                                 # EA[0:N_A]
    eb = z @ wb + bb
    scale_a = 2.0 * jax.nn.softmax(ea, axis=1)
    scale_b = 2.0 * jax.nn.softmax(eb, axis=1)

    # Pass 3: tiled / lane-dense-folded excite (Pallas, fully parallel grid, in-place).
    a_out = _excite(a2, scale_a.astype(jnp.float32), target_block_bytes)
    b_out = _excite(b2, scale_b.astype(jnp.float32), target_block_bytes)
    return a_out.reshape(A.shape), b_out.reshape(B.shape)


# ---------------------------------------------------------------------------
# Public forward
# ---------------------------------------------------------------------------
def flusion_forward(A, B, params, *, force_tiled=False):
    """A: (N_A, C_A, T, H, W).  B: (N_B, C_B, H2, W2).  float32 or bfloat16."""
    n_a, n_b = A.shape[0], B.shape[0]
    if not (n_b == n_a or n_b == 2 * n_a):
        raise ValueError("flusion expects B batch == A batch or == 2 * A batch "
                         f"(got N_A={n_a}, N_B={n_b})")

    vmem_cap, num_tc = _chip_caps()

    act_elems = int(A.size) + int(B.size)
    act_bytes = int(A.size) * A.dtype.itemsize + int(B.size) * B.dtype.itemsize
    w_bytes = sum(int(p.size) * p.dtype.itemsize for p in params)
    # in + out blocks (native dtype) + f32 temporaries for the pooled-sum upcast.
    fused_need = 2 * act_bytes + 4 * act_elems + w_bytes + (2 << 20)

    if num_tc >= 2:
        # v7x: a grid-less pallas_call runs on one TensorCore (half the chip's HBM BW);
        # only keep the fused path for tiny activations where per-call overhead dominates.
        fused_gate = 8 << 20
    else:
        # v5e / v6e: 128 MiB physical VMEM — stay fused (1R+1W vs 2R+1W) while it fits.
        fused_gate = vmem_cap - (32 << 20)

    if force_tiled or fused_need > fused_gate:
        return _flusion_tiled(A, B, params, _TARGET_BLOCK_BYTES)
    return _flusion_fused(A, B, params, fused_need)


# ---------------------------------------------------------------------------
# Params + pure-JAX reference
# ---------------------------------------------------------------------------
def init_params(key, c_a, c_b):
    """Deterministic init matching nn.Linear shapes (weights stored as (in, out))."""
    hidden = (c_a + c_b) // 4
    ks = jax.random.split(key, 6)

    def uni(k, shape, fan_in):
        bound = 1.0 / jnp.sqrt(jnp.float32(fan_in))
        return jax.random.uniform(k, shape, jnp.float32, -bound, bound)

    w1 = uni(ks[0], (c_a + c_b, hidden), c_a + c_b)
    b1 = uni(ks[1], (hidden,), c_a + c_b)
    wa = uni(ks[2], (hidden, c_a), hidden)
    ba = uni(ks[3], (c_a,), hidden)
    wb = uni(ks[4], (hidden, c_b), hidden)
    bb = uni(ks[5], (c_b,), hidden)
    return w1, b1, wa, ba, wb, bb


def flusion_reference(A, B, params):
    """Pure-JAX reference of the PyTorch forward, for verification."""
    w1, b1, wa, ba, wb, bb = params
    n_a, n_b = A.shape[0], B.shape[0]
    sa = jnp.mean(A, axis=(2, 3, 4))
    sb = jnp.mean(B, axis=(2, 3))
    if n_a * 2 == n_b:
        sa = jnp.concatenate([sa, sa], axis=0)
    c = jnp.concatenate([sa, sb], axis=1)
    z = c @ w1 + b1
    ea = z @ wa + ba
    eb = z @ wb + bb
    if n_a * 2 == n_b:
        ea = ea[:n_a]
    ta = 2.0 * jax.nn.softmax(ea, axis=1)
    tb = 2.0 * jax.nn.softmax(eb, axis=1)
    return ta[:, :, None, None, None] * A, tb[:, :, None, None] * B


def _assert_close(got, want, rtol, atol, name):
    got_a, got_b = got
    want_a, want_b = want
    assert jnp.allclose(got_a.astype(jnp.float32), want_a, rtol=rtol, atol=atol), \
        f"{name}: A mismatch"
    assert jnp.allclose(got_b.astype(jnp.float32), want_b, rtol=rtol, atol=atol), \
        f"{name}: B mismatch"


if __name__ == "__main__":
    key = jax.random.PRNGKey(0)
    k_a, k_b, k_p, k_a2, k_b2, k_p2 = jax.random.split(key, 6)

    # 3D stream A: (N_A=2, C_A=8, T=4, H=8, W=8); 2D stream B: (N_B=4, C_B=8, H=8, W=8).
    # N_B = 2 * N_A exercises the SA.repeat(2, 1) / EA[0:N_A] branch.
    A = jax.random.normal(k_a, (2, 8, 4, 8, 8), jnp.float32)
    B = jax.random.normal(k_b, (4, 8, 8, 8), jnp.float32)
    params = init_params(k_p, A.shape[1], B.shape[1])
    ref = flusion_reference(A, B, params)

    # 1) Fused single-block path (what small shapes take); exact softmax now.
    out_fused = flusion_forward(A, B, params)
    jax.block_until_ready(out_fused)
    _assert_close(out_fused, ref, rtol=1e-4, atol=1e-5, name="fused")

    # 2) Tiled multi-pass path (what real model sizes take).
    out_tiled = flusion_forward(A, B, params, force_tiled=True)
    jax.block_until_ready(out_tiled)
    _assert_close(out_tiled, ref, rtol=1e-4, atol=1e-5, name="tiled")

    # 3) bf16 activations through the tiled path (halves HBM traffic; pooled-sum /
    #    MLP / softmax stay float32, excite multiply is bf16-native).
    A16, B16 = A.astype(jnp.bfloat16), B.astype(jnp.bfloat16)
    ref16 = flusion_reference(A16.astype(jnp.float32), B16.astype(jnp.float32), params)
    out_bf16 = flusion_forward(A16, B16, params, force_tiled=True)
    jax.block_until_ready(out_bf16)
    _assert_close(out_bf16, ref16, rtol=2e-2, atol=2e-2, name="tiled-bf16")

    # 4) Realistic small spatial maps (4x7x7 / 7x7) with batch==1: exercises the
    #    lane-dense channel fold in the excite kernel, the MXU scale-repeat trick,
    #    and the pooled-sum channel split (megacore axis at N=1).
    A2 = jax.random.normal(k_a2, (1, 64, 4, 7, 7), jnp.float32)
    B2 = jax.random.normal(k_b2, (2, 64, 7, 7), jnp.float32)
    params2 = init_params(k_p2, A2.shape[1], B2.shape[1])
    ref2 = flusion_reference(A2, B2, params2)
    out2 = flusion_forward(A2, B2, params2, force_tiled=True)
    jax.block_until_ready(out2)
    _assert_close(out2, ref2, rtol=1e-4, atol=1e-5, name="tiled-folded")

    print("KERNEL_OK")
</pallas_src>

<mosaic_0001>
module attributes {stable_mosaic.version = 11 : i64} {
  func.func @_flusion_fused_kernel(%arg0: memref<2x8x256xf32, #tpu.memory_space<vmem>>, %arg1: memref<4x8x64xf32, #tpu.memory_space<vmem>>, %arg2: memref<8x4xf32, #tpu.memory_space<vmem>>, %arg3: memref<8x4xf32, #tpu.memory_space<vmem>>, %arg4: memref<1x4xf32, #tpu.memory_space<vmem>>, %arg5: memref<4x8xf32, #tpu.memory_space<vmem>>, %arg6: memref<1x8xf32, #tpu.memory_space<vmem>>, %arg7: memref<4x8xf32, #tpu.memory_space<vmem>>, %arg8: memref<1x8xf32, #tpu.memory_space<vmem>>, %arg9: memref<2x8x256xf32, #tpu.memory_space<vmem>>, %arg10: memref<4x8x64xf32, #tpu.memory_space<vmem>>) attributes {dimension_semantics = [], scalar_prefetch = 0 : i64, scratch_operands = 0 : i64, tpu.core_type = #tpu.core_type<tc>} {
    %c0 = arith.constant 0 : index
    %c0_0 = arith.constant 0 : index
    %c0_1 = arith.constant 0 : index
    %0 = vector.load %arg0[%c0, %c0_0, %c0_1] : memref<2x8x256xf32, #tpu.memory_space<vmem>>, vector<2x8x256xf32>
    %cst = arith.constant dense<0.000000e+00> : vector<2x8xf32>
    %1 = vector.multi_reduction <add>, %0, %cst [2] : vector<2x8x256xf32> to vector<2x8xf32>
    %cst_2 = arith.constant 3.906250e-03 : f32
    %2 = vector.broadcast %cst_2 : f32 to vector<2x8xf32>
    %3 = arith.mulf %1, %2 : vector<2x8xf32>
    %c0_3 = arith.constant 0 : index
    %c0_4 = arith.constant 0 : index
    %c0_5 = arith.constant 0 : index
    %4 = vector.load %arg1[%c0_3, %c0_4, %c0_5] : memref<4x8x64xf32, #tpu.memory_space<vmem>>, vector<4x8x64xf32>
    %cst_6 = arith.constant dense<0.000000e+00> : vector<4x8xf32>
    %5 = vector.multi_reduction <add>, %4, %cst_6 [2] : vector<4x8x64xf32> to vector<4x8xf32>
    %cst_7 = arith.constant 1.562500e-02 : f32
    %6 = vector.broadcast %cst_7 : f32 to vector<4x8xf32>
    %7 = arith.mulf %5, %6 : vector<4x8xf32>
    %c0_8 = arith.constant 0 : index
    %c0_9 = arith.constant 0 : index
    %8 = vector.load %arg2[%c0_8, %c0_9] : memref<8x4xf32, #tpu.memory_space<vmem>>, vector<8x4xf32>
    %cst_10 = arith.constant dense<0.000000e+00> : vector<2x4xf32>
    %9 = tpu.matmul %3, %8, %cst_10 {dimension_numbers = #tpu.dot_dimension_numbers<[1], [0], [0], [1], [0, 0, 1, 1], [], []>} : vector<2x8xf32>, vector<8x4xf32>, vector<2x4xf32> -> vector<2x4xf32>
    %10 = tpu.concatenate %9, %9 in 0 : vector<2x4xf32>, vector<2x4xf32> -> vector<4x4xf32>
    %c0_11 = arith.constant 0 : index
    %c0_12 = arith.constant 0 : index
    %11 = vector.load %arg3[%c0_11, %c0_12] : memref<8x4xf32, #tpu.memory_space<vmem>>, vector<8x4xf32>
    %cst_13 = arith.constant dense<0.000000e+00> : vector<4x4xf32>
    %12 = tpu.matmul %7, %11, %cst_13 {dimension_numbers = #tpu.dot_dimension_numbers<[1], [0], [0], [1], [0, 0, 1, 1], [], []>} : vector<4x8xf32>, vector<8x4xf32>, vector<4x4xf32> -> vector<4x4xf32>
    %13 = arith.addf %10, %12 : vector<4x4xf32>
    %c0_14 = arith.constant 0 : index
    %c0_15 = arith.constant 0 : index
    %14 = vector.load %arg4[%c0_14, %c0_15] : memref<1x4xf32, #tpu.memory_space<vmem>>, vector<1x4xf32>
    %15 = vector.broadcast %14 : vector<1x4xf32> to vector<4x4xf32>
    %16 = arith.addf %13, %15 : vector<4x4xf32>
    %c0_16 = arith.constant 0 : index
    %c0_17 = arith.constant 0 : index
    %17 = vector.load %arg5[%c0_16, %c0_17] : memref<4x8xf32, #tpu.memory_space<vmem>>, vector<4x8xf32>
    %cst_18 = arith.constant dense<0.000000e+00> : vector<4x8xf32>
    %18 = tpu.matmul %16, %17, %cst_18 {dimension_numbers = #tpu.dot_dimension_numbers<[1], [0], [0], [1], [0, 0, 1, 1], [], []>} : vector<4x4xf32>, vector<4x8xf32>, vector<4x8xf32> -> vector<4x8xf32>
    %c0_19 = arith.constant 0 : index
    %c0_20 = arith.constant 0 : index
    %19 = vector.load %arg6[%c0_19, %c0_20] : memref<1x8xf32, #tpu.memory_space<vmem>>, vector<1x8xf32>
    %20 = vector.broadcast %19 : vector<1x8xf32> to vector<4x8xf32>
    %21 = arith.addf %18, %20 : vector<4x8xf32>
    %c0_21 = arith.constant 0 : index
    %c0_22 = arith.constant 0 : index
    %22 = vector.load %arg7[%c0_21, %c0_22] : memref<4x8xf32, #tpu.memory_space<vmem>>, vector<4x8xf32>
    %cst_23 = arith.constant dense<0.000000e+00> : vector<4x8xf32>
    %23 = tpu.matmul %16, %22, %cst_23 {dimension_numbers = #tpu.dot_dimension_numbers<[1], [0], [0], [1], [0, 0, 1, 1], [], []>} : vector<4x4xf32>, vector<4x8xf32>, vector<4x8xf32> -> vector<4x8xf32>
    %c0_24 = arith.constant 0 : index
    %c0_25 = arith.constant 0 : index
    %24 = vector.load %arg8[%c0_24, %c0_25] : memref<1x8xf32, #tpu.memory_space<vmem>>, vector<1x8xf32>
    %25 = vector.broadcast %24 : vector<1x8xf32> to vector<4x8xf32>
    %26 = arith.addf %23, %25 : vector<4x8xf32>
    %27 = vector.extract_strided_slice %21 {offsets = [0, 0], sizes = [2, 8], strides = [1, 1]} : vector<4x8xf32> to vector<2x8xf32>
    %cst_26 = arith.constant dense<0xFF800000> : vector<2xf32>
    %28 = vector.multi_reduction <maximumf>, %27, %cst_26 [1] : vector<2x8xf32> to vector<2xf32>
    %29 = vector.shape_cast %28 : vector<2xf32> to vector<2x1xf32>
    %30 = vector.broadcast %29 : vector<2x1xf32> to vector<2x8xf32>
    %31 = arith.subf %27, %30 : vector<2x8xf32>
    %32 = math.exp %31 : vector<2x8xf32>
    %cst_27 = arith.constant 2.000000e+00 : f32
    %33 = vector.broadcast %cst_27 : f32 to vector<2x8xf32>
    %34 = arith.mulf %33, %32 : vector<2x8xf32>
    %cst_28 = arith.constant dense<0.000000e+00> : vector<2xf32>
    %35 = vector.multi_reduction <add>, %32, %cst_28 [1] : vector<2x8xf32> to vector<2xf32>
    %36 = vector.shape_cast %35 : vector<2xf32> to vector<2x1xf32>
    %37 = vector.broadcast %36 : vector<2x1xf32> to vector<2x8xf32>
    %38 = arith.divf %34, %37 : vector<2x8xf32>
    %cst_29 = arith.constant dense<0xFF800000> : vector<4xf32>
    %39 = vector.multi_reduction <maximumf>, %26, %cst_29 [1] : vector<4x8xf32> to vector<4xf32>
    %40 = vector.shape_cast %39 : vector<4xf32> to vector<4x1xf32>
    %41 = vector.broadcast %40 : vector<4x1xf32> to vector<4x8xf32>
    %42 = arith.subf %26, %41 : vector<4x8xf32>
    %43 = math.exp %42 : vector<4x8xf32>
    %cst_30 = arith.constant 2.000000e+00 : f32
    %44 = vector.broadcast %cst_30 : f32 to vector<4x8xf32>
    %45 = arith.mulf %44, %43 : vector<4x8xf32>
    %cst_31 = arith.constant dense<0.000000e+00> : vector<4xf32>
    %46 = vector.multi_reduction <add>, %43, %cst_31 [1] : vector<4x8xf32> to vector<4xf32>
    %47 = vector.shape_cast %46 : vector<4xf32> to vector<4x1xf32>
    %48 = vector.broadcast %47 : vector<4x1xf32> to vector<4x8xf32>
    %49 = arith.divf %45, %48 : vector<4x8xf32>
    %c0_32 = arith.constant 0 : index
    %c0_33 = arith.constant 0 : index
    %c0_34 = arith.constant 0 : index
    %50 = vector.load %arg0[%c0_32, %c0_33, %c0_34] : memref<2x8x256xf32, #tpu.memory_space<vmem>>, vector<2x8x256xf32>
    %51 = vector.shape_cast %38 : vector<2x8xf32> to vector<2x8x1xf32>
    %52 = vector.broadcast %51 : vector<2x8x1xf32> to vector<2x8x256xf32>
    %53 = arith.mulf %50, %52 : vector<2x8x256xf32>
    %c0_35 = arith.constant 0 : index
    %c0_36 = arith.constant 0 : index
    %c0_37 = arith.constant 0 : index
    %54 = vector.load %arg9[%c0_35, %c0_36, %c0_37] : memref<2x8x256xf32, #tpu.memory_space<vmem>>, vector<2x8x256xf32>
    tpu.vector_store %arg9[%c0_35, %c0_36, %c0_37], %53 {strides = array<i32>} : memref<2x8x256xf32, #tpu.memory_space<vmem>>, vector<2x8x256xf32>,
    %c0_38 = arith.constant 0 : index
    %c0_39 = arith.constant 0 : index
    %c0_40 = arith.constant 0 : index
    %55 = vector.load %arg1[%c0_38, %c0_39, %c0_40] : memref<4x8x64xf32, #tpu.memory_space<vmem>>, vector<4x8x64xf32>
    %56 = vector.shape_cast %49 : vector<4x8xf32> to vector<4x8x1xf32>
    %57 = vector.broadcast %56 : vector<4x8x1xf32> to vector<4x8x64xf32>
    %58 = arith.mulf %55, %57 : vector<4x8x64xf32>
    %c0_41 = arith.constant 0 : index
    %c0_42 = arith.constant 0 : index
    %c0_43 = arith.constant 0 : index
    %59 = vector.load %arg10[%c0_41, %c0_42, %c0_43] : memref<4x8x64xf32, #tpu.memory_space<vmem>>, vector<4x8x64xf32>
    tpu.vector_store %arg10[%c0_41, %c0_42, %c0_43], %58 {strides = array<i32>} : memref<4x8x64xf32, #tpu.memory_space<vmem>>, vector<4x8x64xf32>,
    return
  }
}

</mosaic_0001>

<bundles_post_ra>
// kernel: tpu_custom_call.1
= control target key start
LH: loop header
LB: loop body
LE: loop exit
PB: predicated region body
PF: predicated region fallthrough
CT: control target
= control target key end

     0   :  { %16 = vsyncpa [#allocation3], 0  ;;  %s942_s0 = inlined_call_operand.hbm [shape: f32[2,8,256], index: 0, kind: input, shape index: {}, may-alias: {0,9}]   ;;  %s943_s1 = inlined_call_operand.hbm [shape: f32[4,8,64], index: 1, kind: input, shape index: {}, may-alias: {1,10}]   ;;  %s944_s2 = inlined_call_operand.vmem [shape: f32[8,4], index: 2, kind: input, shape index: {}]   ;;  %s945_s3 = inlined_call_operand.vmem [shape: f32[8,4], index: 3, kind: input, shape index: {}]   ;;  %s946_s4 = inlined_call_operand.vmem [shape: f32[1,4], index: 4, kind: input, shape index: {}]   ;;  %s947_s5 = inlined_call_operand.vmem [shape: f32[4,8], index: 5, kind: input, shape index: {}]   ;;  %s948_s6 = inlined_call_operand.vmem [shape: f32[1,8], index: 6, kind: input, shape index: {}]   ;;  %s949_s7 = inlined_call_operand.vmem [shape: f32[4,8], index: 7, kind: input, shape index: {}]   ;;  %s950_s8 = inlined_call_operand.vmem [shape: f32[1,8], index: 8, kind: input, shape index: {}]   ;;  %s951_s9 = inlined_call_operand.hbm [shape: f32[2,8,256], index: 9, kind: output, shape index: {0}, may-alias: {0,9}]   ;;  %s952_s10 = inlined_call_operand.hbm [shape: f32[4,8,64], index: 10, kind: output, shape index: {1}, may-alias: {1,10}]  }
   0x1   :  { %17 = vsyncpa [#allocation6], 0 }
   0x2   :  { %18 = vsyncpa [#allocation4], 0 }
   0x3   :  { %19 = vsyncpa [#allocation9], 0  ;;  %s737_s13 = smov [#allocation2]   ;;  %s641_s17 = scalar_lea.hbm %s942_s0, 512 }
   0x4   :  { %s25_s14 = sshll.u32 %s737_s13, 4  ;;  %p642_p0 = scmp.ne.s32.totalorder %s942_s0, %s641_s17  ;;  %s26_s14 = int_to_ptr.vmem [resolvable:$true] %s25_s14 }
   0x5   :  { %p645_p1 = scmp.lt.u32.totalorder %s641_s17, %s942_s0 }
   0x7   :  { %p647_p2 = pnand %p645_p1, %p642_p0 }
   0x9   :  { %650 = shalt.err (!%p647_p2)
}
   0xa   :  { %s651_s22 = scalar_lea.vmem %s26_s14, 512  ;;  %p656_p4 = scmp.lt.s32.totalorder %s26_s14, %s26_s14 }
   0xb   :  { %p652_p3 = scmp.ne.s32.totalorder %s26_s14, %s651_s22  ;;  %p657_p5 = scmp.lt.s32.totalorder %s651_s22, %s651_s22 }
   0xd   :  { %p658_p6 = por %p657_p5, %p656_p4 }
   0xf   :  { %p659_p7 = pnand %p658_p6, %p652_p3 }
  0x11   :  { %662 = shalt.err (!%p659_p7)
}
  0x12   :  { %s738_s23 = smov 256   ;;  %s739_s24 = smov 16  }
  0x13   :  { %31 = dma.hbm_to_vmem [thread:$0]  %s942_s0, 512, %s26_s14, [#allocation3], %s738_s23, %s738_s23, %s739_s24  }
  0x14   :  { %s740_s27 = smov [#allocation5]   ;;  %s663_s11 = scalar_lea.hbm %s943_s1, 512 }
  0x15   :  { %s37_s28 = sshll.u32 %s740_s27, 4  ;;  %p664_p8 = scmp.ne.s32.totalorder %s943_s1, %s663_s11  ;;  %s38_s28 = int_to_ptr.vmem [resolvable:$true] %s37_s28 }
  0x16   :  { %p667_p9 = scmp.lt.u32.totalorder %s663_s11, %s943_s1 }
  0x18   :  { %p669_p10 = pnand %p667_p9, %p664_p8 }
  0x1a   :  { %672 = shalt.err (!%p669_p10)
}
  0x1b   :  { %s673_s17 = scalar_lea.vmem %s38_s28, 512  ;;  %p678_p12 = scmp.lt.s32.totalorder %s38_s28, %s38_s28 }
  0x1c   :  { %p674_p11 = scmp.ne.s32.totalorder %s38_s28, %s673_s17  ;;  %p679_p13 = scmp.lt.s32.totalorder %s673_s17, %s673_s17 }
  0x1e   :  { %p680_p0 = por %p679_p13, %p678_p12 }
  0x20   :  { %p681_p1 = pnand %p680_p0, %p674_p11 }
  0x22   :  { %684 = shalt.err (!%p681_p1)
}
  0x23   :  { %s741_s0 = smov 128   ;;  %s742_s14 = smov 8  }
  0x24   :  { %43 = dma.hbm_to_vmem [thread:$0]  %s943_s1, 512, %s38_s28, [#allocation6], %s741_s0, %s741_s0, %s742_s14  }
  0x25   :  { %729 = dma.done.wait [#allocation3], 512  }
  0x26   :  { %730 = vsyncadd [#allocation3], 4294966784 }
  0x27   :  { %731 = dma.done.wait [#allocation6], 512  }
  0x28   :  { %732 = vsyncadd [#allocation6], 4294966784  ;;  %vm80_vm0 = vcmask 523264   ;;  %v832_v0 = vld [vmem:[#allocation5] sm:$0xff]  ;;  %v836_v2 = vld [vmem:[#allocation2 + $0x8] sm:$0xff]  ;;  %v743_v14 = vmov 0.0   ;;  %v100_v17 = vlaneseq }
  0x29   :  { %v834_v1 = vld [vmem:[#allocation2] sm:$0xff]  ;;  %v81_v3 = vsel %vm80_vm0, %v832_v0, 0.0  ;;  %v842_v5 = vld [vmem:[#allocation5 + $0x8] sm:$0xff]  ;;  %v844_v6 = vld [vmem:[#allocation2 + $0x10] sm:$0xff]  ;;  %603 = vmatprep.subr.mxu0 %v743_v14  ;;  %608 = vmatprep.subr.mxu1 %v743_v14  ;;  %vm744_vm1 = vmmov 0   ;;  %vm110_vm2 = vcmask 1041409  }
  0x2a   :  { %v68_v4 = vadd.f32 %v836_v2, %v834_v1  ;;  %v846_v7 = vld [vmem:[#allocation2 + $0x18] sm:$0xff]  ;;  %82 = vadd.xlane.f32.xlu1 %v81_v3  ;;  %v84_v8 = vsel %vm80_vm0, %v842_v5, 0.0  ;;  %v854_v11 = vld [vmem:[#allocation5 + $0x10] sm:$0xff]  ;;  %v97_v15 = vld [vmem:[%s944_s2] sm:$0xff]  ;;  %605 = vmatprep.mubr.msk.f32.mxu0 %vm744_vm1, %v743_v14  ;;  %v101_v18 = vand.u32 127, %v100_v17  ;;  %v868_v19 = vshrl.u32 %v100_v17, 7 }
  0x2b   :  { %v71_v9 = vadd.f32 %v846_v7, %v844_v6  ;;  %v852_v10 = vld [vmem:[#allocation5 + $0x18] sm:$0xff]  ;;  %v87_v13 = vsel %vm80_vm0, %v854_v11, 0.0  ;;  %604 = vmatpush3.msra.mxu0 %v97_v15  ;;  %610 = vmatprep.mubr.msk.f32.mxu1 %vm744_vm1, %v743_v14  ;;  %v190_v16 = vld [vmem:[%s945_s3] sm:$0xff]  ;;  %vm112_vm3 = vcmask 64512   ;;  %vm212_vm4 = vcmask 1042434  }
  0x2c   :  { %69 = vadd.xlane.f32.xlu0 %v68_v4  ;;  %v90_v12 = vsel %vm80_vm0, %v852_v10, 0.0  ;;  %613 = vmatprep.subr.mxu0 %v743_v14  ;;  %v104_v22 = vsub.s32 %v101_v18, %v868_v19  ;;  %vm214_vm5 = vcmask 1043459   ;;  %v297_v43 = vld [vmem:[%s947_s5] sm:$0xf]  ;;  %vm309_vm6 = vcmask 1043456  }
  0x2d   :  { %609 = vmatpush3.msra.mxu1 %v190_v16  ;;  %v383_v44 = vld [vmem:[%s949_s7] sm:$0xf]  ;;  %vm188_vm7 = vcmask 1041408   ;;  %vm305_vm8 = vcmask 31744   ;;  %vm464_vm9 = vcmask 58368   ;;  %vm477_vm10 = vcmask 60416  }
  0x2e   :  { %85 = vadd.xlane.f32.xlu1 %v84_v8  ;;  %618 = vmatprep.subr.mxu1 %v743_v14  ;;  %v588_v50 = vld [vmem:[%s946_s4] ss:$0 sm:$0xff]  ;;  %s745_s4 = smov [#allocation7]  }
  0x2f   :  { %v589_v54 = vld [vmem:[%s948_s6] ss:$0 sm:$0xff]  ;;  %s557_s6 = sshll.u32 %s745_s4, 4  ;;  %s558_s6 = int_to_ptr.vmem [resolvable:$true] %s557_s6 }
  0x30   :  { %72 = vadd.xlane.f32.xlu0 %v71_v9  ;;  %v592_v55 = vld [vmem:[%s950_s8] ss:$0 sm:$0xff]  ;;  %s685_s8 = scalar_lea.vmem %s558_s6, 512  ;;  %p690_p3 = scmp.lt.s32.totalorder %s558_s6, %s558_s6 }
  0x31   :  { %p686_p2 = scmp.ne.s32.totalorder %s558_s6, %s685_s8  ;;  %p691_p4 = scmp.lt.s32.totalorder %s685_s8, %s685_s8 }
  0x32   :  { %91 = vadd.xlane.f32.xlu1 %v90_v12 }
  0x33   :  { %p692_p5 = por %p691_p4, %p690_p3 }
  0x34   :  { %88 = vadd.xlane.f32.xlu0 %v87_v13 }
  0x35   :  { %p693_p6 = pnand %p692_p5, %p686_p2 }
  0xb7   :  { %v83_v20 = vpop.xlane.xlu1 %82 }
  0xb8   :  { %v93_v28 = vmul.f32 0.015625, %v83_v20 }
  0xb9   :  { %v70_v21 = vpop.xlane.xlu0 %69 }
  0xba   :  { %v74_v23 = vmul.f32 0.00390625, %v70_v21  ;;  %v198_v37 = vrot.slane %v93_v28, %v104_v22 }
  0xbb   :  { %v86_v24 = vpop.xlane.xlu1 %85 }
  0xbc   :  { %v94_v25 = vmul.f32 0.015625, %v86_v24  ;;  %v105_v29 = vrot.slane %v74_v23, %v104_v22  ;;  %v499_v23 = vsub.s32 1, %v868_v19 }
  0xbd   :  { %v73_v26 = vpop.xlane.xlu0 %72 }
  0xbe   :  { %v75_v27 = vmul.f32 0.00390625, %v73_v26  ;;  %v202_v32 = vrot.slane %v94_v25, %v104_v22 }
  0xbf   :  { %v92_v31 = vpop.xlane.xlu1 %91 }
  0xc0   :  { %v109_v30 = vrot.slane %v75_v27, %v104_v22  ;;  %v96_v34 = vmul.f32 0.015625, %v92_v31  ;;  %v211_v40 = vsel %vm110_vm2, %v202_v32, %v198_v37  ;;  %v532_v31 = vsub.s32 2, %v868_v19 }
  0xc1   :  { %v89_v33 = vpop.xlane.xlu0 %88 }
  0xc2   :  { %v95_v35 = vmul.f32 0.015625, %v89_v33  ;;  %v111_v36 = vsel %vm110_vm2, %v109_v30, %v105_v29  ;;  %v210_v38 = vrot.slane %v96_v34, %v104_v22 }
  0xc3   :  { %606 = vmatmul.mubr.msk.f32.vlgmr.msra.gmra.mrb[0].mxu0 %vm112_vm3, %v111_v36 }
  0xc4   :  { %v206_v39 = vrot.slane %v95_v35, %v104_v22  ;;  %615 = vmatprep.mubr.msk.f32.mxu0 %vm744_vm1, %v743_v14  ;;  %614 = vmatpush3.msk.msra.mxu0 %vm309_vm6, %v297_v43  ;;  %v492_v22 = vsub.s32 0, %v868_v19  ;;  %v539_v35 = vsub.s32 3, %v868_v19 }
  0xc6   :  { %v213_v41 = vsel %vm212_vm4, %v206_v39, %v211_v40 }
  0xc7   :  { %v215_v42 = vsel %vm214_vm5, %v210_v38, %v213_v41 }
  0xc8   :  { %611 = vmatmul.mubr.msk.f32.vlgmr.msra.gmra.mrb[0].mxu1 %vm112_vm3, %v215_v42 }
  0xc9   :  { %620 = vmatprep.mubr.msk.f32.mxu1 %vm744_vm1, %v743_v14  ;;  %619 = vmatpush3.msk.msra.mxu1 %vm309_vm6, %v383_v44 }
 0x196   :  { %v181_v45 = vpop.f32.mrb[0].mxu0 }
 0x197   :  { %v186_v46 = vrot.slane %v181_v45, 6  ;;  %v607_v47 = vpop.f32.mrb[1].mxu0 }
 0x199   :  { %v189_v48 = vsel %vm188_vm7, %v181_v45, %v186_v46 }
 0x19b   :  { %v284_v49 = vpop.f32.mrb[0].mxu1 }
 0x19c   :  { %v288_v51 = vadd.f32 %v284_v49, %v189_v48  ;;  %v612_v52 = vpop.f32.mrb[1].mxu1 }
 0x19e   :  { %v296_v53 = vadd.f32 %v588_v50, %v288_v51 }
 0x1a0   :  { %616 = vmatmul.mubr.msk.f32.vlgmr.msra.gmra.mrb[2].mxu0 %vm305_vm8, %v296_v53  ;;  %621 = vmatmul.mubr.msk.f32.vlgmr.msra.gmra.mrb[2].mxu1 %vm305_vm8, %v296_v53 }
 0x273   :  { %v379_v56 = vpop.f32.mrb[2].mxu0  ;;  %v460_v57 = vpop.f32.mrb[2].mxu1 }
 0x274   :  { %v380_v58 = vadd.f32 %v589_v54, %v379_v56  ;;  %v461_v59 = vadd.f32 %v592_v55, %v460_v57  ;;  %v617_v60 = vpop.f32.mrb[3].mxu0  ;;  %v622_v61 = vpop.f32.mrb[3].mxu1 }
 0x276   :  { %v465_v62 = vsel %vm464_vm9, %v380_v58, -inf  ;;  %v478_v63 = vsel %vm477_vm10, %v461_v59, -inf }
 0x277   :  { %466 = vmax.xlane.f32.xlu0 %v465_v62  ;;  %479 = vmax.xlane.f32.xlu1 %v478_v63 }
 0x304   :  { %v467_v3 = vpop.xlane.xlu0 %466  ;;  %v480_v4 = vpop.xlane.xlu1 %479 }
 0x305   :  { %v468_v8 = vsub.f32 %v380_v58, %v467_v3  ;;  %v481_v9 = vsub.f32 %v461_v59, %v480_v4 }
 0x307   :  { %v469_v12 = vmul.f32 1.442695, %v468_v8  ;;  %v482_v13 = vmul.f32 1.442695, %v481_v9 }
 0x309   :  { %633 = vpow2.f32 %v469_v12 }
 0x30a   :  { %635 = vpow2.f32 %v482_v13 }
 0x313   :  { %v634_v14 = vpop.eup %633 }
 0x314   :  { %v636_v15 = vpop.eup %635  ;;  %v472_v16 = vsel %vm464_vm9, %v634_v14, 0.0  ;;  %v471_v21 = vmul.f32 2.0, %v634_v14 }
 0x315   :  { %473 = vadd.xlane.f32.xlu0 %v472_v16  ;;  %v485_v17 = vsel %vm477_vm10, %v636_v15, 0.0  ;;  %v484_v27 = vmul.f32 2.0, %v636_v15 }
 0x316   :  { %486 = vadd.xlane.f32.xlu1 %v485_v17 }
 0x3a2   :  { %v474_v18 = vpop.xlane.xlu0 %473 }
 0x3a3   :  { %637 = vrcp.f32 %v474_v18  ;;  %v487_v20 = vpop.xlane.xlu1 %486 }
 0x3a4   :  { %639 = vrcp.f32 %v487_v20 }
 0x3ad   :  { %v638_v24 = vpop.eup %637 }
 0x3ae   :  { %v640_v25 = vpop.eup %639  ;;  %v476_v26 = vmul.f32 %v638_v24, %v471_v21 }
 0x3af   :  { %v489_v30 = vmul.f32 %v640_v25, %v484_v27 }
 0x3b0   :  { %v493_v28 = vrot.slane %v476_v26, %v492_v22  ;;  %v500_v29 = vrot.slane %v476_v26, %v499_v23 }
 0x3b1   :  { %v533_v32 = vrot.slane %v489_v30, %v532_v31  ;;  %v519_v33 = vrot.slane %v489_v30, %v492_v22  ;;  %v526_v34 = vrot.slane %v489_v30, %v499_v23  ;;  %v540_v36 = vrot.slane %v489_v30, %v539_v35 }
 0x3b2   :  { %495 = vbcast.lane.b32.xlu0 %v493_v28, 256  ;;  %502 = vbcast.lane.b32.xlu1 %v500_v29, 256 }
 0x3b6   :  { %535 = vbcast.lane.b32.xlu0 %v533_v32, 256  ;;  %521 = vbcast.lane.b32.xlu1 %v519_v33, 256 }
 0x3ba   :  { %528 = vbcast.lane.b32.xlu1 %v526_v34, 256 }
 0x3be   :  { %542 = vbcast.lane.b32.xlu1 %v540_v36, 256 }
 0x424   :  { %v496_v37 = vpop.permute.xlu0 %495  ;;  %v503_v38 = vpop.permute.xlu1 %502 }
 0x425   :  { %v504_v39 = vmul.f32 %v496_v37, %v834_v1  ;;  %v505_v40 = vmul.f32 %v496_v37, %v836_v2  ;;  %v506_v41 = vmul.f32 %v503_v38, %v844_v6  ;;  %v507_v42 = vmul.f32 %v503_v38, %v846_v7 }
 0x427   :  { %508 = vst [vmem:[#allocation7] sm:$0xff] %v504_v39  ;;  %509 = vst [vmem:[#allocation7 + $0x8] sm:$0xff] %v505_v40 }
 0x428   :  { %510 = vst [vmem:[#allocation7 + $0x10] sm:$0xff] %v506_v41  ;;  %511 = vst [vmem:[#allocation7 + $0x18] sm:$0xff] %v507_v42  ;;  %v536_v19 = vpop.permute.xlu0 %535  ;;  %v522_v43 = vpop.permute.xlu1 %521 }
 0x429   :  { %696 = shalt.err (!%p693_p6)
}
 0x42a   :  { %s697_s13 = scalar_lea.hbm %s951_s9, 512 }
 0x42b   :  { %p698_p7 = scmp.ne.s32.totalorder %s951_s9, %s697_s13  ;;  %p701_p8 = scmp.lt.u32.totalorder %s697_s13, %s951_s9 }
 0x42d   :  { %p703_p9 = pnand %p701_p8, %p698_p7 }
 0x42f   :  { %706 = shalt.err (!%p703_p9)
}
 0x430   :  { %563 = dma.vmem_to_hbm [thread:$0]  %s558_s6, 512, %s951_s9, [#allocation4], %s738_s23, %s738_s23, %s739_s24   ;;  %v546_v1 = vmul.f32 %v536_v19, %v854_v11  ;;  %v544_v2 = vmul.f32 %v522_v43, %v832_v0  ;;  %v529_v6 = vpop.permute.xlu1 %528 }
 0x431   :  { %v545_v7 = vmul.f32 %v529_v6, %v842_v5  ;;  %s746_s20 = smov [#allocation8]  }
 0x432   :  { %550 = vst.msk [vmem:[#allocation8 + $0x10] sm:$0xff] %vm80_vm0, %v546_v1  ;;  %548 = vst.msk [vmem:[#allocation8] sm:$0xff] %vm80_vm0, %v544_v2  ;;  %s569_s21 = sshll.u32 %s746_s20, 4  ;;  %s570_s21 = int_to_ptr.vmem [resolvable:$true] %s569_s21 }
 0x433   :  { %549 = vst.msk [vmem:[#allocation8 + $0x8] sm:$0xff] %vm80_vm0, %v545_v7  ;;  %s707_s9 = scalar_lea.vmem %s570_s21, 512  ;;  %p712_p11 = scmp.lt.s32.totalorder %s570_s21, %s570_s21 }
 0x434   :  { %v543_v44 = vpop.permute.xlu1 %542  ;;  %p708_p10 = scmp.ne.s32.totalorder %s570_s21, %s707_s9  ;;  %p713_p12 = scmp.lt.s32.totalorder %s707_s9, %s707_s9 }
 0x435   :  { %v547_v45 = vmul.f32 %v543_v44, %v852_v10 }
 0x436   :  { %p714_p13 = por %p713_p12, %p712_p11 }
 0x437   :  { %551 = vst.msk [vmem:[#allocation8 + $0x18] sm:$0xff] %vm80_vm0, %v547_v45 }
 0x438   :  { %p715_p0 = pnand %p714_p13, %p708_p10 }
 0x43a   :  { %718 = shalt.err (!%p715_p0)
}
 0x43b   :  { %s719_s22 = scalar_lea.hbm %s952_s10, 512 }
 0x43c   :  { %p720_p1 = scmp.ne.s32.totalorder %s952_s10, %s719_s22  ;;  %p723_p2 = scmp.lt.u32.totalorder %s719_s22, %s952_s10 }
 0x43e   :  { %p725_p3 = pnand %p723_p2, %p720_p1 }
 0x440   :  { %728 = shalt.err (!%p725_p3)
}
 0x441   :  { %575 = dma.vmem_to_hbm [thread:$0]  %s570_s21, 512, %s952_s10, [#allocation9], %s741_s0, %s741_s0, %s742_s14  }
 0x442   :  { %733 = dma.done.wait [#allocation4], 512  }
 0x443   :  { %734 = vsyncadd [#allocation4], 4294966784 }
 0x444   :  { %735 = dma.done.wait [#allocation9], 512  }
 0x445   :  { %736 = vsyncadd [#allocation9], 4294966784 }
 0x446   :  { %582 = vsyncpa [#allocation3], 1 }
 0x447   :  { %583 = vsyncpa [#allocation6], 1 }
 0x448   :  { %584 = vsyncpa [#allocation4], 1 }
 0x449   :  { %585 = vsyncpa [#allocation9], 1 }

</bundles_post_ra>
